<compile_context>
chip_gen: v5e
topology: v5e:2x2
jax: 0.10.0
libtpu: 0.0.40
codegen_flags: <defaults>
</compile_context>

<pallas_src>
import functools

import jax
import jax.numpy as jnp
from jax.experimental import pallas as pl
from jax.experimental.pallas import tpu as pltpu


def _attn_head_kernel(x_ref, wqkv_ref, mask_ref, o_ref, *,
                      scale, head_size, seg, batch_tile, seq_len):
    H, Bt, T = head_size, batch_tile, seq_len
    in_dtype = x_ref.dtype

    x2d = x_ref[...]                 # (Bt*T, C), native dtype (f32 or bf16)
    w = wqkv_ref[...]                # (C, 3*seg) fused [Q | K | V], native dtype

    # --- Fused QKV projection: a single MXU matmul, f32 accumulation -------
    qkv = jnp.dot(x2d, w, preferred_element_type=jnp.float32)   # (Bt*T, 3*seg)

    # Slice lane-aligned segments; fold softmax scale into Q (T*H mults).
    # Cast back to the input dtype so the attention matmuls run at native
    # MXU rate; accumulation below stays f32.
    q = (qkv[:, 0 * seg:0 * seg + H] * jnp.float32(scale)) \
        .astype(in_dtype).reshape(Bt, T, H)
    k = qkv[:, 1 * seg:1 * seg + H].astype(in_dtype).reshape(Bt, T, H)
    v = qkv[:, 2 * seg:2 * seg + H].astype(in_dtype).reshape(Bt, T, H)

    # --- Scaled dot-product scores (batched over the batch tile) -----------
    scores = jnp.einsum('bqh,bkh->bqk', q, k,
                        preferred_element_type=jnp.float32)      # (Bt, T, T) f32

    # Additive causal mask (0 / large-finite-negative), VMEM-resident input.
    scores = scores + mask_ref[...][None, :, :]

    # --- Numerically-stable softmax (f32, exact divide) ---------------------
    m = jnp.max(scores, axis=-1, keepdims=True)
    e = jnp.exp(scores - m)
    denom = jnp.sum(e, axis=-1, keepdims=True)
    weights = e / denom

    # (dropout_rate = 0.0 -> identity)

    # --- Attention output, stored lane-dense as (Bt, T*H) -------------------
    out = jnp.einsum('bqk,bkh->bqh', weights.astype(v.dtype), v,
                     preferred_element_type=jnp.float32)         # (Bt, T, H) f32
    o_ref[...] = out.reshape(Bt, T * H).astype(o_ref.dtype)


def _vmem_footprint_bytes(bt, T, C, H, seg, itemsize):
    """Rough per-grid-step VMEM footprint (double-buffered I/O + f32 temps)."""
    x_tile = 2 * bt * T * C * itemsize          # double-buffered input tile
    w = 2 * C * 3 * seg * itemsize              # fused weight (pipeline copies)
    mask = 2 * T * T * 4                        # additive causal mask
    out_tile = 2 * bt * T * H * itemsize        # double-buffered output tile
    qkv = bt * T * 3 * seg * 4                  # f32 projection result
    attn = 3 * bt * T * T * 4                   # scores / exp / weights (f32)
    ctx = bt * T * H * 4                        # f32 attention output
    return x_tile + w + mask + out_tile + qkv + attn + ctx


def _pick_batch_tile(B, T, C, H, seg, itemsize, budget_bytes):
    """Largest divisor of B that fits the VMEM budget, preferring a >=2-step
    grid (pipeline overlap + v7x megacore sharding)."""
    fits = [bt for bt in range(1, B + 1)
            if B % bt == 0
            and _vmem_footprint_bytes(bt, T, C, H, seg, itemsize) <= budget_bytes]
    if not fits:
        return 1
    multi = [bt for bt in fits if B // bt >= 2]
    return max(multi) if multi else max(fits)


def scaled_dot_product_self_attention_head(x, wk, wq, wv, *,
                                           batch_tile=None,
                                           vmem_budget_bytes=12 * 1024 * 1024,
                                           vmem_limit_bytes=32 * 1024 * 1024):
    """x: (B, T, C); wk/wq/wv: (C, H) (nn.Linear weight transposed).

    Returns (B, T, H), matching the PyTorch module's forward (dropout=0).
    """
    B, T, C = x.shape
    H = wq.shape[1]
    scale = float(H) ** -0.5
    itemsize = jnp.dtype(x.dtype).itemsize

    # Fuse [Q | K | V] projections; pad each segment to a 128-lane boundary so
    # the in-kernel column slices start tile-aligned.
    seg = H if H % 128 == 0 else ((H + 127) // 128) * 128

    def _pad_seg(w):
        return w if seg == H else jnp.pad(w, ((0, 0), (0, seg - H)))

    w_qkv = jnp.concatenate([_pad_seg(wq), _pad_seg(wk), _pad_seg(wv)],
                            axis=1).astype(x.dtype)               # (C, 3*seg)

    # Additive causal mask (0 where allowed, large finite negative otherwise).
    neg_big = jnp.float32(-0.7 * jnp.finfo(jnp.float32).max)
    r = jnp.arange(T)
    add_mask = jnp.where(r[None, :] <= r[:, None],
                         jnp.float32(0.0), neg_big).astype(jnp.float32)

    if batch_tile is None:
        batch_tile = _pick_batch_tile(B, T, C, H, seg, itemsize,
                                      budget_bytes=vmem_budget_bytes)
    Bt = int(batch_tile)

    # Pad batch to a multiple of the tile (no-op when Bt divides B).
    Bp = ((B + Bt - 1) // Bt) * Bt
    if Bp != B:
        x = jnp.pad(x, ((0, Bp - B), (0, 0), (0, 0)))
    G = Bp // Bt

    # Present x as (G, Bt*T, C): the grid-blocked axis leads, the kernel block's
    # last two dims equal the full array dims, and no in-kernel reshape is needed.
    x3 = x.reshape(G, Bt * T, C)

    kernel = functools.partial(_attn_head_kernel, scale=scale, head_size=H,
                               seg=seg, batch_tile=Bt, seq_len=T)

    out3 = pl.pallas_call(
        kernel,
        out_shape=jax.ShapeDtypeStruct((G, Bt, T * H), x.dtype),
        grid_spec=pltpu.PrefetchScalarGridSpec(
            num_scalar_prefetch=0,
            grid=(G,),
            in_specs=[
                pl.BlockSpec((None, Bt * T, C), lambda b: (b, 0, 0)),  # x tile
                pl.BlockSpec((C, 3 * seg), lambda b: (0, 0)),          # fused W (resident)
                pl.BlockSpec((T, T), lambda b: (0, 0)),                # causal mask (resident)
            ],
            out_specs=pl.BlockSpec((None, Bt, T * H), lambda b: (b, 0, 0)),
        ),
        compiler_params=pltpu.CompilerParams(
            dimension_semantics=("parallel",),
            vmem_limit_bytes=vmem_limit_bytes,
        ),
    )(x3, w_qkv, add_mask)

    return out3.reshape(Bp, T, H)[:B]


def reference(x, wk, wq, wv):
    """Pure-JAX reference matching the PyTorch forward (dropout=0)."""
    H = wq.shape[1]
    scale = float(H) ** -0.5
    K = x @ wk
    Q = x @ wq
    V = x @ wv
    scores = (Q @ jnp.swapaxes(K, -2, -1)) * scale
    T = x.shape[1]
    mask = jnp.tril(jnp.ones((T, T), dtype=bool))
    scores = jnp.where(mask, scores, -jnp.inf)
    weights = jax.nn.softmax(scores, axis=-1)
    return weights @ V


if __name__ == "__main__":
    # Shapes consistent with the module:
    #   batch=2, block_size (seq)=8, dim_token_embedding=32, head_size=16
    B, T, C, H = 2, 8, 32, 16

    key = jax.random.PRNGKey(0)
    kx, kk, kq, kv = jax.random.split(key, 4)

    x = jax.random.normal(kx, (B, T, C), dtype=jnp.float32)
    # nn.Linear(dim_token_embedding, head_size, bias=False) weight is (H, C);
    # we store the transpose (C, H) so the kernel does plain x @ W.
    wk = jax.random.normal(kk, (C, H), dtype=jnp.float32) * (C ** -0.5)
    wq = jax.random.normal(kq, (C, H), dtype=jnp.float32) * (C ** -0.5)
    wv = jax.random.normal(kv, (C, H), dtype=jnp.float32) * (C ** -0.5)

    out = scaled_dot_product_self_attention_head(x, wk, wq, wv)
    out = jax.block_until_ready(out)

    ref = reference(x, wk, wq, wv)
    assert out.shape == (B, T, H)
    max_err = float(jnp.max(jnp.abs(out - ref)))
    assert jnp.allclose(out, ref, atol=1e-5, rtol=1e-5), \
        f"mismatch vs reference (max abs err {max_err})"

    print("KERNEL_OK")
</pallas_src>

<mosaic_0001>
module attributes {stable_mosaic.version = 11 : i64} {
  func.func @_attn_head_kernel(%arg0: i32, %arg1: memref<1x8x32xf32, #tpu.memory_space<vmem>>, %arg2: memref<32x384xf32, #tpu.memory_space<vmem>>, %arg3: memref<8x8xf32, #tpu.memory_space<vmem>>, %arg4: memref<1x1x128xf32, #tpu.memory_space<vmem>>) attributes {dimension_semantics = [#tpu.dimension_semantics<parallel>], iteration_bounds = array<i64: 2>, scalar_prefetch = 0 : i64, scratch_operands = 0 : i64, tpu.core_type = #tpu.core_type<tc>, window_params = [{transform_indices = @transform_0, window_bounds = array<i64: 1, 8, 32>}, {pipeline_mode = #tpu.pipeline_mode<synchronous>, transform_indices = @transform_1, window_bounds = array<i64: 32, 384>}, {pipeline_mode = #tpu.pipeline_mode<synchronous>, transform_indices = @transform_2, window_bounds = array<i64: 8, 8>}, {transform_indices = @transform_3, window_bounds = array<i64: 1, 1, 128>}]} {
    %c0 = arith.constant 0 : index
    %c0_0 = arith.constant 0 : index
    %c0_1 = arith.constant 0 : index
    %0 = vector.load %arg1[%c0, %c0_0, %c0_1] : memref<1x8x32xf32, #tpu.memory_space<vmem>>, vector<1x8x32xf32>
    %1 = vector.shape_cast %0 : vector<1x8x32xf32> to vector<8x32xf32>
    %c0_2 = arith.constant 0 : index
    %c0_3 = arith.constant 0 : index
    %2 = vector.load %arg2[%c0_2, %c0_3] : memref<32x384xf32, #tpu.memory_space<vmem>>, vector<32x384xf32>
    %cst = arith.constant dense<0.000000e+00> : vector<8x384xf32>
    %3 = tpu.matmul %1, %2, %cst {dimension_numbers = #tpu.dot_dimension_numbers<[1], [0], [0], [1], [0, 0, 1, 1], [], []>} : vector<8x32xf32>, vector<32x384xf32>, vector<8x384xf32> -> vector<8x384xf32>
    %4 = vector.extract_strided_slice %3 {offsets = [0, 0], sizes = [8, 16], strides = [1, 1]} : vector<8x384xf32> to vector<8x16xf32>
    %cst_4 = arith.constant 2.500000e-01 : f32
    %5 = vector.broadcast %cst_4 : f32 to vector<8x16xf32>
    %6 = arith.mulf %4, %5 : vector<8x16xf32>
    %7 = vector.shape_cast %6 : vector<8x16xf32> to vector<1x8x16xf32>
    %8 = vector.extract_strided_slice %3 {offsets = [0, 128], sizes = [8, 16], strides = [1, 1]} : vector<8x384xf32> to vector<8x16xf32>
    %9 = vector.shape_cast %8 : vector<8x16xf32> to vector<1x8x16xf32>
    %10 = vector.extract_strided_slice %3 {offsets = [0, 256], sizes = [8, 16], strides = [1, 1]} : vector<8x384xf32> to vector<8x16xf32>
    %11 = vector.shape_cast %10 : vector<8x16xf32> to vector<1x8x16xf32>
    "tpu.trace_start"() <{level = 10 : i32, message = "bqh,bkh->bqk"}> : () -> ()
    %cst_5 = arith.constant dense<0.000000e+00> : vector<1x8x8xf32>
    %12 = tpu.matmul %7, %9, %cst_5 {dimension_numbers = #tpu.dot_dimension_numbers<[2], [2], [1], [1], [0, 0, 0, 1, 1, 1], [0], [0]>} : vector<1x8x16xf32>, vector<1x8x16xf32>, vector<1x8x8xf32> -> vector<1x8x8xf32>
    "tpu.trace_stop"() : () -> ()
    %c0_6 = arith.constant 0 : index
    %c0_7 = arith.constant 0 : index
    %13 = vector.load %arg3[%c0_6, %c0_7] : memref<8x8xf32, #tpu.memory_space<vmem>>, vector<8x8xf32>
    %14 = vector.shape_cast %13 : vector<8x8xf32> to vector<1x8x8xf32>
    %15 = arith.addf %12, %14 : vector<1x8x8xf32>
    %cst_8 = arith.constant dense<0xFF800000> : vector<1x8xf32>
    %16 = vector.multi_reduction <maximumf>, %15, %cst_8 [2] : vector<1x8x8xf32> to vector<1x8xf32>
    %17 = vector.shape_cast %16 : vector<1x8xf32> to vector<1x8x1xf32>
    %18 = vector.broadcast %17 : vector<1x8x1xf32> to vector<1x8x8xf32>
    %19 = arith.subf %15, %18 : vector<1x8x8xf32>
    %20 = math.exp %19 : vector<1x8x8xf32>
    %cst_9 = arith.constant dense<0.000000e+00> : vector<1x8xf32>
    %21 = vector.multi_reduction <add>, %20, %cst_9 [2] : vector<1x8x8xf32> to vector<1x8xf32>
    %22 = vector.shape_cast %21 : vector<1x8xf32> to vector<1x8x1xf32>
    %23 = vector.broadcast %22 : vector<1x8x1xf32> to vector<1x8x8xf32>
    %24 = arith.divf %20, %23 : vector<1x8x8xf32>
    "tpu.trace_start"() <{level = 10 : i32, message = "bqk,bkh->bqh"}> : () -> ()
    %cst_10 = arith.constant dense<0.000000e+00> : vector<1x8x16xf32>
    %25 = tpu.matmul %24, %11, %cst_10 {dimension_numbers = #tpu.dot_dimension_numbers<[2], [1], [1], [2], [0, 0, 0, 1, 1, 2], [0], [0]>} : vector<1x8x8xf32>, vector<1x8x16xf32>, vector<1x8x16xf32> -> vector<1x8x16xf32>
    "tpu.trace_stop"() : () -> ()
    %26 = vector.shape_cast %25 : vector<1x8x16xf32> to vector<1x128xf32>
    %c0_11 = arith.constant 0 : index
    %c0_12 = arith.constant 0 : index
    %c0_13 = arith.constant 0 : index
    %27 = vector.load %arg4[%c0_11, %c0_12, %c0_13] : memref<1x1x128xf32, #tpu.memory_space<vmem>>, vector<1x1x128xf32>
    %28 = vector.shape_cast %27 : vector<1x1x128xf32> to vector<1x128xf32>
    %29 = vector.shape_cast %26 : vector<1x128xf32> to vector<1x1x128xf32>
    tpu.vector_store %arg4[%c0_11, %c0_12, %c0_13], %29 {strides = array<i32>} : memref<1x1x128xf32, #tpu.memory_space<vmem>>, vector<1x1x128xf32>,
    return
  }
  func.func @transform_0(%arg0: i32) -> (i32, i32, i32) {
    %c0_i32 = arith.constant 0 : i32
    %c0_i32_0 = arith.constant 0 : i32
    %c0_i32_1 = arith.constant 0 : i32
    return %arg0, %c0_i32, %c0_i32_0 : i32, i32, i32
  }
  func.func @transform_1(%arg0: i32) -> (i32, i32) {
    %c0_i32 = arith.constant 0 : i32
    %c0_i32_0 = arith.constant 0 : i32
    %c0_i32_1 = arith.constant 0 : i32
    return %c0_i32, %c0_i32_0 : i32, i32
  }
  func.func @transform_2(%arg0: i32) -> (i32, i32) {
    %c0_i32 = arith.constant 0 : i32
    %c0_i32_0 = arith.constant 0 : i32
    %c0_i32_1 = arith.constant 0 : i32
    return %c0_i32, %c0_i32_0 : i32, i32
  }
  func.func @transform_3(%arg0: i32) -> (i32, i32, i32) {
    %c0_i32 = arith.constant 0 : i32
    %c0_i32_0 = arith.constant 0 : i32
    %c0_i32_1 = arith.constant 0 : i32
    return %arg0, %c0_i32, %c0_i32_0 : i32, i32, i32
  }
}

</mosaic_0001>

<bundles_post_ra>
// kernel: tpu_custom_call.1
= control target key start
LH: loop header
LB: loop body
LE: loop exit
PB: predicated region body
PF: predicated region fallthrough
CT: control target
= control target key end

     0   :  { %8 = vsyncpa [#allocation3], 0  ;;  %s1009_s0 = inlined_call_operand.hbm [shape: f32[2,8,32], index: 0, kind: input, shape index: {}]   ;;  %s1010_s1 = inlined_call_operand.hbm [shape: f32[32,384], index: 1, kind: input, shape index: {}]   ;;  %s1011_s2 = inlined_call_operand.hbm [shape: f32[8,8], index: 2, kind: input, shape index: {}]   ;;  %s1012_s3 = inlined_call_operand.hbm [shape: f32[2,1,128], index: 3, kind: output, shape index: {}]  }
   0x1   :  { %10 = vsyncpa [#allocation3 + $0x1], 0 }
   0x2   :  { %11 = vsyncpa [#allocation6], 0 }
   0x3   :  { %12 = vsyncpa [#allocation4], 0 }
   0x4   :  { %14 = vsyncpa [#allocation4 + $0x1], 0  ;;  %s846_s12 = smov 0   ;;  %s848_s13 = smov 0  }
   0x5   :  { %s850_s14 = smov 0   ;;  %s852_s15 = smov 0  }
   0x6 LB: > { %s130_s18 = sshll.u32 %s1010_s1, 4  ;;  %s870_s19 = sadd.s32 4294967295, %s811_s15   ;;  %s811_s15 = sphi %s852_s15, %s1023_s15   ;;  %s807_s14 = sphi %s850_s14, %s1022_s14   ;;  %s803_s13 = sphi %s848_s13, %s1021_s13   ;;  %s799_s12 = sphi %s846_s12, %s1020_s12   ;;  %s131_s18 = int_to_ptr.hbm [resolvable:$true] %s130_s18 }
   0x7   : > { %p551_p0 = scmp.ge.s32.totalorder %s811_s15, 1  ;;  %p41_p1 = scmp.eq.s32.totalorder %s870_s19, 0 }
   0x8   : > { %p119_p2 = scmp.lt.s32.totalorder %s811_s15, 3  ;;  %s813_s21 = smov [#allocation5]  }
   0x9   : > { %s132_s22 = sshll.u32 %s813_s21, 4  ;;  %s145_s25 = sshll.u32 %s1011_s2, 4  ;;  %s133_s22 = int_to_ptr.vmem [resolvable:$true] %s132_s22  ;;  %s146_s25 = int_to_ptr.hbm [resolvable:$true] %s145_s25 }
   0xa   : > { %p875_p3 = pnand %p551_p0, %p119_p2  ;;  %s814_s26 = smov [#allocation7]  }
   0xb   : > { %s147_s27 = sshll.u32 %s814_s26, 4  ;;  %s815_s28 = smov 384   ;;  %s148_s27 = int_to_ptr.vmem [resolvable:$true] %s147_s27 }
   0xc   : > { %p581_p4 = pneg %p875_p3  ;;  %s816_s29 = smov 24  }
   0xd   : > { %s550_s30 = sadd.s32 4294967294, %s811_s15   ;;  %s889_s4 = sadd.s32 1, %s811_s15  }
   0xe   : > { %p582_p6 = pnand %p581_p4, %p41_p1  ;;  %s24_s5 = ssub.s32 %s811_s15, %s889_s4 }
   0xf   : > { %s27_s6 = sadd.s32 1, %s807_s14  ;;  %p25_p7 = scmp.eq.s32.totalorder %s24_s5, 0 }
  0x10   : > { %584 = dma.hbm_to_vmem [thread:$0]  (!%p582_p6), %s131_s18, 1536, %s133_s22, [#allocation6], %s815_s28, %s815_s28, %s816_s29  }
  0x11   : > { %587 = dma.hbm_to_vmem [thread:$0]  (!%p582_p6), %s146_s25, 128, %s148_s27, [#allocation6]  }
  0x12   : > { %p34_p8 = scmp.ne.s32.totalorder %s807_s14, %s803_s13  ;;  %p35_p9 = scmp.eq.s32.totalorder %s811_s15, 0 }
  0x13   : > { %p40_p10 = scmp.ne.s32.totalorder %s803_s13, %s799_s12  ;;  %p106_p13 = scmp.eq.s32.totalorder %s870_s19, 1 }
  0x14   : > { %s900_s7 = scalar_select %p25_p7, %s807_s14, %s27_s6  }
  0x15   : > { %p902_p11 = por %p35_p9, %p34_p8  ;;  %p908_p12 = por %p41_p1, %p40_p10 }
  0x16   : > { %p112_p0 = scmp.eq.s32.totalorder %s550_s30, 1  ;;  %p598_p2 = scmp.lt.s32.totalorder %s811_s15, 2 }
  0x17   : > { %s158_s10 = sand.u32 1, %s807_s14   ;;  %p915_p4 = por %p106_p13, %p34_p8 }
  0x18   : > { %p919_p6 = por %p112_p0, %p40_p10  ;;  %s555_s17 = sshll.u32 %s158_s10, 3 }
  0x19   : > { %s556_s18 = sshll.u32 %s811_s15, 3  ;;  %s162_s24 = scalar_lea.vmem [#allocation2], %s555_s17 }
  0x1a   : > { %s166_s23 = scalar_lea.hbm %s1009_s0, %s556_s18  ;;  %s170_s25 = sshll.u32 %s162_s24, 4  ;;  %s171_s25 = int_to_ptr.vmem [resolvable:$true] %s170_s25 }
  0x1b   : > { %s168_s26 = sshll.u32 %s166_s23, 4  ;;  %p929_p7 = pnand %p598_p2, %p902_p11  ;;  %s169_s26 = int_to_ptr.hbm [resolvable:$true] %s168_s26 }
  0x1c   : > { %s159_s28 = scalar_lea.sflag [#allocation3], %s158_s10  ;;  %s711_s29 = sshra.s32 %s169_s26, 4  ;;  %s712_s29 = int_to_ptr.hbm [resolvable:$true] %s711_s29 }
  0x1d   : > { %s713_s30 = scalar_lea.hbm %s712_s29, 8  ;;  %p715_p9 = pneg %p929_p7 }
  0x1e   : > { %p714_p8 = scmp.ne.s32.totalorder %s712_s29, %s713_s30  ;;  %s718_s17 = scalar_lea.hbm %s1009_s0, 16 }
  0x1f   : > { %p719_p11 = scmp.lt.s32.totalorder %s712_s29, %s1009_s0  ;;  %p720_p0 = scmp.lt.s32.totalorder %s718_s17, %s713_s30 }
  0x20   : > { %p716_p10 = pnand %p715_p9, %p714_p8 }
  0x21   : > { %p721_p2 = por %p720_p0, %p719_p11 }
  0x22   : > { %p717_p13 = pneg %p716_p10 }
  0x24   : > { %p722_p5 = pnand %p721_p2, %p717_p13 }
  0x26   : > { %725 = shalt.err (!%p722_p5)
}
  0x27   : > { %591 = dma.hbm_to_vmem [thread:$0]  (!%p929_p7), %s169_s26, 128, %s171_s25, %s159_s28  }
  0x28   : > { %179 = sbr.rel (%p875_p3) target bundleno = 858 (0x35a), region = 32  ;;  %s946_s10 = sand.u32 (!%p875_p3), 1, %s803_s13  }
  0x29   : > { %s558_s21 = sshll.u32 (!%p875_p3), %s946_s10, 3  ;;  %s182_s22 = scalar_lea.sflag (!%p875_p3), [#allocation3], %s946_s10 }
  0x2a   : > { %s185_s23 = scalar_lea.vmem (!%p875_p3), [#allocation2], %s558_s21 }
  0x2d   : > { %786 = dma.done.wait (%p908_p12), %s182_s22, 128  }
  0x2e   : > { %788 = vsyncadd (%p908_p12), %s182_s22, 4294967168 }
  0x2f   : > { %790 = dma.done.wait (%p41_p1), [#allocation6], 1664  }
  0x30   : > { %792 = vsyncadd (%p41_p1), [#allocation6], 4294965632  ;;  %v229_v0 = vld [vmem:[#allocation5 + $0x50] sm:$0xff]  ;;  %v228_v1 = vld [vmem:[#allocation5 + $0x48] sm:$0xff]  ;;  %vm231_vm0 = vcmask 261120   ;;  %vm297_vm1 = vcmask 130048   ;;  %s461_s5 = scalar_lea.hbm %s1012_s3, %s870_s19 }
  0x31   : > { %v226_v2 = vld [vmem:[#allocation5 + $0x38] sm:$0xff]  ;;  %267 = vmatpush.msra.mxu1 %v229_v0  ;;  %247 = vmatpush.msra.mxu0 %v228_v1  ;;  %v225_v3 = vld [vmem:[#allocation5 + $0x30] sm:$0xff]  ;;  %v223_v4 = vld [vmem:[#allocation5 + $0x20] sm:$0xff]  ;;  %vm324_vm2 = vcmask 64512   ;;  %v817_v38 = vmov 1983009808  }
  0x32   : > { %v222_v5 = vld [vmem:[#allocation5 + $0x18] sm:$0xff]  ;;  %v220_v6 = vld [vmem:[#allocation5 + $0x8] sm:$0xff]  ;;  %v219_v7 = vld [vmem:[#allocation5] sm:$0xff]  ;;  %v376_v39 = vunpack.c.l.s4 %v817_v38  ;;  %v818_v40 = vmov 1934713408   ;;  %vm373_vm7 = vcmask 1047556  }
  0x33   : > { %268 = vmatpush.msra.mxu1 %v226_v2  ;;  %248 = vmatpush.msra.mxu0 %v225_v3  ;;  %v218_v8 = vld [vmem:[%s185_s23] sm:$0xff]  ;;  %v296_v12 = vld [vmem:[#allocation7] sm:$0xff]  ;;  %v224_v18 = vld [vmem:[#allocation5 + $0x28] sm:$0xff]  ;;  %v386_v41 = vunpack.c.l.s4 %v818_v40  ;;  %s819_s20 = smov 16   ;;  %s820_s9 = smov 64   ;;  %vm441_vm8 = vcmask 392192  }
  0x34   : > { %v230_v16 = vld [vmem:[#allocation5 + $0x58] sm:$0xff]  ;;  %v227_v17 = vld [vmem:[#allocation5 + $0x40] sm:$0xff]  ;;  %v221_v19 = vld [vmem:[#allocation5 + $0x10] sm:$0xff]  ;;  %v377_v42 = vunpack.c.0.s8 %v376_v39  ;;  %s821_s24 = smov 80   ;;  %s822_s25 = smov 32   ;;  %vm443_vm9 = vcmask 523264  }
  0x35   : > { %269 = vmatpush.msra.mxu1 %v223_v4  ;;  %249 = vmatpush.msra.mxu0 %v222_v5  ;;  %v387_v43 = vunpack.c.0.s8 %v386_v41  ;;  %s823_s26 = smov 48   ;;  %s824_s27 = smov 96   ;;  %vm445_vm10 = vcmask 654336   ;;  %vm447_vm11 = vcmask 785408   ;;  %vm449_vm12 = vcmask 916480  }
  0x36   : > { %287 = vmatpush.msra.mxu2 %v230_v16  ;;  %s825_s28 = smov 112   ;;  %s217_s6 = scalar_lea.vmem [#allocation8], %s946_s10 }
  0x37   : > { %270 = vmatpush.msra.mxu1 %v220_v6  ;;  %250 = vmatpush.msra.mxu0 %v219_v7  ;;  %s463_s17 = sshll.u32 %s217_s6, 4  ;;  %s465_s18 = sshll.u32 %s461_s5, 4  ;;  %s464_s17 = int_to_ptr.vmem [resolvable:$true] %s463_s17  ;;  %s466_s18 = int_to_ptr.hbm [resolvable:$true] %s465_s18 }
  0x38   : > { %562 = vmatmul.msk.f32.vlgmr.msra.gmra.mxu1 %vm231_vm0, %v218_v8  ;;  %561 = vmatmul.msk.f32.vlgmr.msra.gmra.mxu0 %vm231_vm0, %v218_v8  ;;  %s453_s8 = scalar_lea.sflag [#allocation4], %s946_s10  ;;  %s755_s19 = sshra.s32 %s466_s18, 4  ;;  %s756_s19 = int_to_ptr.hbm [resolvable:$true] %s755_s19 }
  0x39   : > { %288 = vmatpush.msra.mxu2 %v227_v17  ;;  %s757_s21 = scalar_lea.hbm %s756_s19, 1  ;;  %p762_p12 = scmp.lt.s32.totalorder %s756_s19, %s1012_s3 }
  0x3a   : > { %p758_p1 = scmp.ne.s32.totalorder %s756_s19, %s757_s21 }
  0x3b   : > { %289 = vmatpush.msra.mxu2 %v224_v18 }
  0x3c   : > { %p759_p3 = pnand %p758_p1, %p915_p4 }
  0x3d   : > { %290 = vmatpush.msra.mxu2 %v221_v19 }
  0x3e   : > { %563 = vmatmul.msk.f32.vlgmr.msra.gmra.mxu2 %vm231_vm0, %v218_v8  ;;  %p760_p5 = pneg %p759_p3 }
  0xb5   : > { %v272_v9 = vpop.f32.mrf.mxu1  ;;  %v252_v10 = vpop.f32.mrf.mxu0 }
  0xb6   : > { %v295_v11 = vmul.f32 0.25, %v252_v10  ;;  %564 = vmatpush.xpose.msk.msra.mxu3 %vm297_vm1, %v272_v9 }
  0xb9   : > { %565 = vmatmul.msk.f32.vlgmr.msra.gmra.mxu3 %vm297_vm1, %v295_v11 }
  0xc1   : > { %v292_v25 = vpop.f32.mrf.mxu2 }
  0xc2   : > { %367 = vmatpush.msrb.mxu3 %v292_v25 }
 0x13c   : > { %v321_v13 = vpop.f32.mrf.mxu3 }
 0x13d   : > { %v322_v14 = vadd.f32 %v321_v13, %v296_v12 }
 0x13f   : > { %v325_v15 = vsel %vm324_vm2, %v322_v14, -inf }
 0x140   : > { %326 = vmax.xlane.f32.xlu0 %v325_v15 }
 0x1b3   : > { %v327_v20 = vpop.xlane.xlu0 %326 }
 0x1b4   : > { %v328_v21 = vsub.f32 %v322_v14, %v327_v20 }
 0x1b6   : > { %v329_v22 = vmul.f32 1.442695, %v328_v21 }
 0x1b8   : > { %647 = vpow2.f32 %v329_v22 }
 0x1be   : > { %v648_v23 = vpop.eup %647 }
 0x1bf   : > { %v331_v24 = vsel %vm324_vm2, %v648_v23, 0.0 }
 0x1c0   : > { %332 = vadd.xlane.f32.xlu0 %v331_v24 }
 0x233   : > { %v333_v26 = vpop.xlane.xlu0 %332 }
 0x234   : > { %649 = vrcp.f32 %v333_v26  ;;  %v345_v30 = vand.u32 2147483648, %v333_v26  ;;  %v343_v32 = vand.u32 2147483647, %v333_v26  ;;  %vm339_vm4 = vweird.f32 %v333_v26 }
 0x236   : > { %v346_v34 = vor.u32 1.1754944e-38, %v345_v30  ;;  %vm344_vm6 = vcmp.eq.f32.partialorder %v343_v32, 8.507059e+37 }
 0x23a   : > { %v650_v27 = vpop.eup %649 }
 0x23b   : > { %v335_v28 = vmul.f32 %v650_v27, %v333_v26  ;;  %vm340_vm3 = vweird.f32 %v650_v27 }
 0x23c   : > { %vm341_vm5 = vmor %vm339_vm4, %vm340_vm3 }
 0x23d   : > { %v336_v29 = vsub.f32 1.0, %v335_v28 }
 0x23f   : > { %v337_v31 = vmul.f32 %v650_v27, %v336_v29 }
 0x241   : > { %v338_v33 = vadd.f32 %v650_v27, %v337_v31 }
 0x243   : > { %v342_v35 = vsel %vm341_vm5, %v650_v27, %v338_v33 }
 0x244   : > { %v347_v36 = vsel %vm344_vm6, %v346_v34, %v342_v35 }
 0x245   : > { %v348_v37 = vmul.f32 %v648_v23, %v347_v36 }
 0x247   : > { %566 = vmatmul.msk.f32.vlgmr.msrb.gmra.mxu3 %vm324_vm2, %v348_v37 }
 0x2ca   : > { %v369_v44 = vpop.f32.mrf.mxu3 }
 0x2cb   : > { %v372_v45 = vrot.slane %v369_v44, 4  ;;  %v378_v46 = vperm.slane %v369_v44, %v377_v42 }
 0x2cd   : > { %v374_v47 = vsel %vm373_vm7, 0.0, %v372_v45  ;;  %v383_v48 = vrot.slane %v378_v46, 4  ;;  %v388_v49 = vperm.slane %v378_v46, %v387_v43 }
 0x2ce   : > { %v382_v50 = vperm.slane %v374_v47, %v377_v42 }
 0x2cf   : > { %v384_v51 = vsel %vm373_vm7, 0.0, %v383_v48  ;;  %v403_v52 = vrot.slane %v388_v49, 4 }
 0x2d0   : > { %v398_v53 = vperm.slane %v382_v50, %v387_v43  ;;  %v392_v55 = vperm.slane %v384_v51, %v387_v43  ;;  %v393_v56 = vrot.slane %v382_v50, 4 }
 0x2d1   : > { %v404_v54 = vsel %vm373_vm7, 0.0, %v403_v52 }
 0x2d2   : > { %412 = vrot.lane.b32.xlu1 %v404_v54, %s819_s20  ;;  %424 = vrot.lane.b32.xlu2 %v398_v53, %s820_s9  ;;  %v407_v57 = vrot.slane %v398_v53, 4  ;;  %v405_v59 = vrot.slane %v392_v55, 4  ;;  %v394_v60 = vsel %vm373_vm7, 0.0, %v393_v56  ;;  %s761_s20 = scalar_lea.hbm %s1012_s3, 2 }
 0x2d3   : > { %v402_v62 = vperm.slane %v394_v60, %v387_v43  ;;  %p763_p7 = scmp.lt.s32.totalorder %s761_s20, %s757_s21 }
 0x2d4   : > { %v408_v58 = vsel %vm373_vm7, 0.0, %v407_v57  ;;  %v406_v61 = vsel %vm373_vm7, 0.0, %v405_v59 }
 0x2d5   : > { %428 = vrot.lane.b32.xlu0 %v408_v58, %s821_s24  ;;  %v409_v63 = vrot.slane %v402_v62, 4  ;;  %p764_p8 = por %p763_p7, %p762_p12 }
 0x2d7   : > { %v410_v0 = vsel %vm373_vm7, 0.0, %v409_v63  ;;  %p765_p9 = pnand %p764_p8, %p760_p5 }
 0x2da   : > { %416 = vrot.lane.b32.xlu1 %v392_v55, %s822_s25  ;;  %420 = vrot.lane.b32.xlu2 %v406_v61, %s823_s26 }
 0x2e2   : > { %432 = vrot.lane.b32.xlu1 %v402_v62, %s824_s27  ;;  %436 = vrot.lane.b32.xlu2 %v410_v0, %s825_s28 }
 0x32c   : > { %v425_v1 = vpop.permute.xlu2 %424 }
 0x334   : > { %v421_v3 = vpop.permute.xlu2 %420 }
 0x33c   : > { %v437_v12 = vpop.permute.xlu2 %436 }
 0x344   : > { %v413_v2 = vpop.permute.xlu1 %412 }
 0x345   : > { %v439_v4 = vsel %vm297_vm1, %v388_v49, %v413_v2 }
 0x347   : > { %v429_v9 = vpop.permute.xlu0 %428 }
 0x34c   : > { %v417_v5 = vpop.permute.xlu1 %416 }
 0x34d   : > { %v440_v6 = vsel %vm231_vm0, %v439_v4, %v417_v5 }
 0x34e   : > { %v442_v7 = vsel %vm441_vm8, %v440_v6, %v421_v3 }
 0x34f   : > { %v444_v8 = vsel %vm443_vm9, %v442_v7, %v425_v1 }
 0x350   : > { %v446_v10 = vsel %vm445_vm10, %v444_v8, %v429_v9 }
 0x354   : > { %v433_v11 = vpop.permute.xlu1 %432 }
 0x355   : > { %v448_v13 = vsel %vm447_vm11, %v446_v10, %v433_v11 }
 0x356   : > { %v450_v14 = vsel %vm449_vm12, %v448_v13, %v437_v12 }
 0x357   : > { %451 = vst [vmem:[%s217_s6] sm:$0x1] %v450_v14 }
 0x358   : > { %768 = shalt.err (!%p765_p9)
}
 0x359   : > { %579 = dma.vmem_to_hbm [thread:$0]  (%p915_p4), %s464_s17, 16, %s466_s18, %s453_s8  }
 0x35a PF: > { %s477_s10 = sand.u32 1, %s799_s12   ;;  %p1019_p10 = scmp.ge.s32.totalorder %s811_s15, 2 }
 0x35b   : > { %s478_s25 = scalar_lea.sflag [#allocation4], %s477_s10 }
 0x35c   : > { %p593_p13 = pnand %p1019_p10, %p919_p6 }
 0x35e   : > { %p594_p11 = pneg %p593_p13 }
 0x360   : > { %794 = dma.done.wait (%p594_p11), %s478_s25, 16  }
 0x361   : > { %796 = vsyncadd (%p594_p11), %s478_s25, 4294967280  ;;  %p17_p0 = scmp.ge.s32.totalorder %s889_s4, 4   ;;  %s1020_s12 = smov %s803_s13 }
 0x362   : > { %s1021_s13 = smov %s807_s14  ;;  %s1022_s14 = smov %s900_s7 }
 0x363   : > { %s1023_s15 = smov %s889_s4  ;;  %19 = sbr.rel (!%p17_p0) target bundleno = 6 (0x6), region = 85 }
 0x368   :  { %483 = vsyncpa [#allocation3], 1 }
 0x369   :  { %485 = vsyncpa [#allocation3 + $0x1], 1 }
 0x36a   :  { %486 = vsyncpa [#allocation6], 1 }
 0x36b   :  { %487 = vsyncpa [#allocation4], 1 }
 0x36c   :  { %489 = vsyncpa [#allocation4 + $0x1], 1 }

</bundles_post_ra>
